<compile_context>
chip_gen: v5e
topology: v5e:2x2
jax: 0.10.0
libtpu: 0.0.40
codegen_flags: <defaults>
</compile_context>

<pallas_src>
import functools

import jax
import jax.numpy as jnp
from jax.experimental import pallas as pl
from jax.experimental.pallas import tpu as pltpu


# ---------------------------------------------------------------------------
# Path 1 (C, C_out <= 16): fused kernel, writes the final NCHW layout.
# ---------------------------------------------------------------------------
def _upsample_fused_kernel(x_ref, d_ref, wl_ref, o_ref, *, C, C_out):
    """One (image, row-block) grid step.

    x_ref:  (C, th, W)           input rows of image n
    d_ref:  (W, 2W)              0/1 duplicate matrix, D[w, o] = (o // 2 == w)
    wl_ref: (C+1, C_out, 2, 2W)  lane-expanded weights:
                                 wl[c, co, kh, 2w+kw] = weight[c, co, kh, kw];
                                 channel C is the bias row (bias[co] everywhere)
    o_ref:  (C_out, th, 4W)      rows of the (N, C_out, H, 4W) view of the
                                 NCHW output; lane o = kh*2W + 2w + kw
    """
    th = x_ref.shape[1]
    W = x_ref.shape[2]
    x = x_ref[...].astype(jnp.float32)            # (C, th, W)
    d = d_ref[...].astype(jnp.float32)            # (W, 2W)

    # Lane-duplicate every channel once (exact 0/1 matmul on the idle MXU):
    # xd[c][t, 2w+kw] = x[c, t, w] for kw in {0, 1}.
    xd = [jnp.dot(x[c], d, preferred_element_type=jnp.float32)
          for c in range(C)]

    for co in range(C_out):
        halves = []
        for kh in range(2):
            # Bias row (extra channel at index C) starts the accumulator.
            acc = (jnp.zeros((th, 2 * W), jnp.float32)
                   + wl_ref[C, co, kh:kh + 1, :].astype(jnp.float32))
            for c in range(C):
                wrow = wl_ref[c, co, kh:kh + 1, :].astype(jnp.float32)  # (1, 2W)
                acc = acc + wrow * xd[c]
            halves.append(acc)
        # [kh=0 | kh=1] along lanes -> one dense (th, 4W) store per channel.
        o_ref[co] = jnp.concatenate(halves, axis=-1).astype(o_ref.dtype)


def _pick_row_tile(H, W, C, C_out, N):
    """Rows per grid step: a divisor of H that is a multiple of 8 (or H itself),
    sized so double-buffered in/out blocks stay well under scoped VMEM, and
    avoiding a 1-step grid (v7x megacore) when a smaller legal tile exists."""
    budget = 8 * 1024 * 1024

    def block_bytes(th):
        return 2 * 4 * th * W * (C + 4 * C_out)   # double-buffered in + out, f32

    divisors = [dv for dv in range(H, 0, -1) if H % dv == 0]
    cands = [dv for dv in divisors if (dv == H or dv % 8 == 0)] or [H]
    fitting = [dv for dv in cands if block_bytes(dv) <= budget] or cands
    th = fitting[0]
    if N * (H // th) < 2:
        smaller = [dv for dv in fitting if dv < th]
        if smaller:
            th = smaller[0]
    return th


def _upsample_fused(x, weight, bias):
    N, C, H, W = x.shape
    _, C_out, _, _ = weight.shape
    th = _pick_row_tile(H, W, C, C_out, N)
    grid = (N, pl.cdiv(H, th))

    # Lane-expanded weights (tiny, built once by XLA):
    # wl[c, co, kh, 2w+kw] = weight[c, co, kh, kw]; channel C = bias row.
    wl_core = jnp.tile(weight.reshape(C, C_out, 2, 1, 2),
                       (1, 1, 1, W, 1)).reshape(C, C_out, 2, 2 * W)
    wl_bias = jnp.broadcast_to(bias.reshape(1, C_out, 1, 1),
                               (1, C_out, 2, 2 * W))
    wl = jnp.concatenate([wl_core, wl_bias], axis=0).astype(jnp.float32)

    # 0/1 duplicate matrix: (x @ d)[t, o] = x[t, o // 2]   (exact in f32).
    o_idx = jnp.arange(2 * W)[None, :]
    w_idx = jnp.arange(W)[:, None]
    dmat = (o_idx // 2 == w_idx).astype(jnp.float32)        # (W, 2W)

    R = 4 * C_out
    flops = 2 * N * H * W * C * R + 2 * N * H * W * C * (2 * W)
    bytes_accessed = 4 * (x.size + wl.size + dmat.size + N * C_out * H * 4 * W)

    kernel = functools.partial(_upsample_fused_kernel, C=C, C_out=C_out)
    out_view = pl.pallas_call(
        kernel,
        out_shape=jax.ShapeDtypeStruct((N, C_out, H, 4 * W), x.dtype),
        grid_spec=pltpu.PrefetchScalarGridSpec(
            num_scalar_prefetch=0,
            grid=grid,
            in_specs=[
                pl.BlockSpec((None, C, th, W), lambda n, i: (n, 0, i, 0)),
                pl.BlockSpec((W, 2 * W), lambda n, i: (0, 0)),
                pl.BlockSpec((C + 1, C_out, 2, 2 * W),
                             lambda n, i: (0, 0, 0, 0)),
            ],
            out_specs=pl.BlockSpec((None, C_out, th, 4 * W),
                                   lambda n, i: (n, 0, i, 0)),
        ),
        compiler_params=pltpu.CompilerParams(
            dimension_semantics=("parallel", "parallel"),
        ),
        cost_estimate=pl.CostEstimate(flops=flops, transcendentals=0,
                                      bytes_accessed=bytes_accessed),
    )(x, dmat, wl)

    # Free reshape (pure split/merge of contiguous dims): (H, 4W) -> (2H, 2W).
    return out_view.reshape(N, C_out, 2 * H, 2 * W)


# ---------------------------------------------------------------------------
# Path 2 (C > 16): MXU column matmul (channels-on-sublanes, pixels-on-lanes).
# ---------------------------------------------------------------------------
def _upsample_cols_kernel(x_ref, w_ref, b_ref, o_ref):
    # x_ref: (C, tm), w_ref: (R, C), b_ref: (R, 1), o_ref: (R, tm)
    acc = jnp.dot(w_ref[...], x_ref[...], preferred_element_type=jnp.float32)
    o_ref[...] = (acc + b_ref[...].astype(jnp.float32)).astype(o_ref.dtype)


def _pick_col_tile(HW, C, R, N):
    budget = 24 * 1024 * 1024

    def need(tm):
        return 8 * tm * (C + R) + 4 * R * C       # 2x(in+out) tiles + weight

    cap = 2048
    while cap > 128 and need(cap) > budget:
        cap -= 128
    if HW <= cap:
        tm = HW                                    # full extent is always legal
    else:
        tm = 0
        t = (cap // 128) * 128
        while t >= 128:                            # prefer an exact divisor
            if HW % t == 0:
                tm = t
                break
            t -= 128
        if tm == 0:
            tm = (cap // 128) * 128                # masked tail, accepted
    # v7x megacore: avoid a degenerate (1, 1) grid when cheaply possible.
    if N * (-(-HW // tm)) < 2 and HW % 256 == 0:
        tm = min(tm, HW // 2)
    return max(tm, 1)


def _upsample_cols(x, weight, bias):
    N, C, H, W = x.shape
    _, C_out, _, _ = weight.shape
    R = 4 * C_out
    HW = H * W

    x_cols = x.reshape(N, C, HW)                   # free view of NCHW
    # W2T[co*4 + kh*2 + kw, ci] = weight[ci, co, kh, kw]
    w2t = jnp.transpose(weight, (1, 2, 3, 0)).reshape(R, C).astype(jnp.float32)
    b2 = jnp.repeat(bias, 4).reshape(R, 1).astype(jnp.float32)

    tm = _pick_col_tile(HW, C, R, N)
    grid = (N, pl.cdiv(HW, tm))

    # Actual VMEM need with ~2x headroom, never claiming v7x's full 64 MiB.
    need = 8 * tm * (C + R) + 4 * R * C + 4 * R
    vmem_limit = int(min(48 * 1024 * 1024, max(16 * 1024 * 1024, 2 * need)))

    flops = 2 * N * HW * C * R
    bytes_accessed = 4 * (N * C * HW + R * C + R + N * R * HW)

    out_cols = pl.pallas_call(
        _upsample_cols_kernel,
        out_shape=jax.ShapeDtypeStruct((N, R, HW), x.dtype),
        grid_spec=pltpu.PrefetchScalarGridSpec(
            num_scalar_prefetch=0,
            grid=grid,
            in_specs=[
                pl.BlockSpec((None, C, tm), lambda n, j: (n, 0, j)),
                pl.BlockSpec((R, C), lambda n, j: (0, 0)),
                pl.BlockSpec((R, 1), lambda n, j: (0, 0)),
            ],
            out_specs=pl.BlockSpec((None, R, tm), lambda n, j: (n, 0, j)),
        ),
        compiler_params=pltpu.CompilerParams(
            dimension_semantics=("parallel", "parallel"),
            vmem_limit_bytes=vmem_limit,
        ),
        cost_estimate=pl.CostEstimate(flops=flops, transcendentals=0,
                                      bytes_accessed=bytes_accessed),
    )(x_cols, w2t, b2)

    # TODO(synk): fold this (kh, kw) interleave into the kernel for the
    # large-C path too (needs an in-kernel pixels->(sublane,lane) transpose);
    # already done for the small-C fused path above.
    y = out_cols.reshape(N, C_out, 2, 2, H, W)
    y = jnp.transpose(y, (0, 1, 4, 2, 5, 3))
    return y.reshape(N, C_out, 2 * H, 2 * W)


# ---------------------------------------------------------------------------
# Public entry point: ConvTranspose2d(dim, dim, k=2, s=2, p=0) forward.
# ---------------------------------------------------------------------------
@jax.jit
def upsample_conv_transpose2d(x, weight, bias):
    """x: (N, C, H, W); weight: (C_in, C_out, 2, 2) (PyTorch layout);
    bias: (C_out,). Returns (N, C_out, 2H, 2W)."""
    N, C, H, W = x.shape
    C_in, C_out, kH, kW = weight.shape
    assert C_in == C and (kH, kW) == (2, 2)
    if C <= 16 and C_out <= 16:
        return _upsample_fused(x, weight, bias)
    return _upsample_cols(x, weight, bias)


def _reference(x, weight, bias):
    # out[n, co, 2h+kh, 2w+kw] = sum_ci x[n, ci, h, w] * W[ci, co, kh, kw] + b[co]
    N, C, H, W = x.shape
    _, C_out, _, _ = weight.shape
    y = jnp.einsum("nchw,cokl->nohkwl", x, weight)
    y = y.reshape(N, C_out, 2 * H, 2 * W)
    return y + bias[None, :, None, None]


if __name__ == "__main__":
    key = jax.random.PRNGKey(0)
    k_x, k_w, k_b = jax.random.split(key, 3)

    N, C, H, W = 2, 4, 16, 16
    x = jax.random.normal(k_x, (N, C, H, W), dtype=jnp.float32)

    # PyTorch-style uniform(-sqrt(k), sqrt(k)) init, k = 1 / (C_in * kH * kW).
    fan = C * 2 * 2
    bound = 1.0 / jnp.sqrt(jnp.float32(fan))
    weight = jax.random.uniform(k_w, (C, C, 2, 2), jnp.float32, -bound, bound)
    bias = jax.random.uniform(k_b, (C,), jnp.float32, -bound, bound)

    out = upsample_conv_transpose2d(x, weight, bias)
    out = jax.block_until_ready(out)

    ref = _reference(x, weight, bias)
    assert out.shape == (N, C, 2 * H, 2 * W)
    assert jnp.allclose(out, ref, atol=1e-5, rtol=1e-5)

    print("KERNEL_OK")
</pallas_src>

<mosaic_0001>
module attributes {stable_mosaic.version = 11 : i64} {
  func.func @_upsample_fused_kernel(%arg0: i32, %arg1: i32, %arg2: memref<1x4x16x16xf32, #tpu.memory_space<vmem>>, %arg3: memref<16x32xf32, #tpu.memory_space<vmem>>, %arg4: memref<5x4x2x32xf32, #tpu.memory_space<vmem>>, %arg5: memref<1x4x16x64xf32, #tpu.memory_space<vmem>>) attributes {dimension_semantics = [#tpu.dimension_semantics<parallel>, #tpu.dimension_semantics<parallel>], iteration_bounds = array<i64: 2, 1>, scalar_prefetch = 0 : i64, scratch_operands = 0 : i64, tpu.core_type = #tpu.core_type<tc>, window_params = [{transform_indices = @transform_0, window_bounds = array<i64: 1, 4, 16, 16>}, {pipeline_mode = #tpu.pipeline_mode<synchronous>, transform_indices = @transform_1, window_bounds = array<i64: 16, 32>}, {pipeline_mode = #tpu.pipeline_mode<synchronous>, transform_indices = @transform_2, window_bounds = array<i64: 5, 4, 2, 32>}, {transform_indices = @transform_3, window_bounds = array<i64: 1, 4, 16, 64>}]} {
    %c0 = arith.constant 0 : index
    %c0_0 = arith.constant 0 : index
    %c0_1 = arith.constant 0 : index
    %c0_2 = arith.constant 0 : index
    %0 = vector.load %arg2[%c0, %c0_0, %c0_1, %c0_2] : memref<1x4x16x16xf32, #tpu.memory_space<vmem>>, vector<1x4x16x16xf32>
    %1 = vector.shape_cast %0 : vector<1x4x16x16xf32> to vector<4x16x16xf32>
    %c0_3 = arith.constant 0 : index
    %c0_4 = arith.constant 0 : index
    %2 = vector.load %arg3[%c0_3, %c0_4] : memref<16x32xf32, #tpu.memory_space<vmem>>, vector<16x32xf32>
    %3 = vector.extract_strided_slice %1 {offsets = [0, 0, 0], sizes = [1, 16, 16], strides = [1, 1, 1]} : vector<4x16x16xf32> to vector<1x16x16xf32>
    %4 = vector.shape_cast %3 : vector<1x16x16xf32> to vector<16x16xf32>
    %cst = arith.constant dense<0.000000e+00> : vector<16x32xf32>
    %5 = tpu.matmul %4, %2, %cst {dimension_numbers = #tpu.dot_dimension_numbers<[1], [0], [0], [1], [0, 0, 1, 1], [], []>} : vector<16x16xf32>, vector<16x32xf32>, vector<16x32xf32> -> vector<16x32xf32>
    %6 = vector.extract_strided_slice %1 {offsets = [1, 0, 0], sizes = [1, 16, 16], strides = [1, 1, 1]} : vector<4x16x16xf32> to vector<1x16x16xf32>
    %7 = vector.shape_cast %6 : vector<1x16x16xf32> to vector<16x16xf32>
    %cst_5 = arith.constant dense<0.000000e+00> : vector<16x32xf32>
    %8 = tpu.matmul %7, %2, %cst_5 {dimension_numbers = #tpu.dot_dimension_numbers<[1], [0], [0], [1], [0, 0, 1, 1], [], []>} : vector<16x16xf32>, vector<16x32xf32>, vector<16x32xf32> -> vector<16x32xf32>
    %9 = vector.extract_strided_slice %1 {offsets = [2, 0, 0], sizes = [1, 16, 16], strides = [1, 1, 1]} : vector<4x16x16xf32> to vector<1x16x16xf32>
    %10 = vector.shape_cast %9 : vector<1x16x16xf32> to vector<16x16xf32>
    %cst_6 = arith.constant dense<0.000000e+00> : vector<16x32xf32>
    %11 = tpu.matmul %10, %2, %cst_6 {dimension_numbers = #tpu.dot_dimension_numbers<[1], [0], [0], [1], [0, 0, 1, 1], [], []>} : vector<16x16xf32>, vector<16x32xf32>, vector<16x32xf32> -> vector<16x32xf32>
    %12 = vector.extract_strided_slice %1 {offsets = [3, 0, 0], sizes = [1, 16, 16], strides = [1, 1, 1]} : vector<4x16x16xf32> to vector<1x16x16xf32>
    %13 = vector.shape_cast %12 : vector<1x16x16xf32> to vector<16x16xf32>
    %cst_7 = arith.constant dense<0.000000e+00> : vector<16x32xf32>
    %14 = tpu.matmul %13, %2, %cst_7 {dimension_numbers = #tpu.dot_dimension_numbers<[1], [0], [0], [1], [0, 0, 1, 1], [], []>} : vector<16x16xf32>, vector<16x32xf32>, vector<16x32xf32> -> vector<16x32xf32>
    %cst_8 = arith.constant 0.000000e+00 : f32
    %15 = vector.broadcast %cst_8 : f32 to vector<16x32xf32>
    %c4 = arith.constant 4 : index
    %c0_9 = arith.constant 0 : index
    %c0_10 = arith.constant 0 : index
    %c0_11 = arith.constant 0 : index
    %16 = vector.load %arg4[%c4, %c0_9, %c0_10, %c0_11] : memref<5x4x2x32xf32, #tpu.memory_space<vmem>>, vector<1x1x1x32xf32>
    %17 = vector.shape_cast %16 : vector<1x1x1x32xf32> to vector<1x32xf32>
    %18 = vector.broadcast %17 : vector<1x32xf32> to vector<16x32xf32>
    %19 = arith.addf %15, %18 : vector<16x32xf32>
    %c0_12 = arith.constant 0 : index
    %c0_13 = arith.constant 0 : index
    %c0_14 = arith.constant 0 : index
    %c0_15 = arith.constant 0 : index
    %20 = vector.load %arg4[%c0_12, %c0_13, %c0_14, %c0_15] : memref<5x4x2x32xf32, #tpu.memory_space<vmem>>, vector<1x1x1x32xf32>
    %21 = vector.shape_cast %20 : vector<1x1x1x32xf32> to vector<1x32xf32>
    %22 = vector.broadcast %21 : vector<1x32xf32> to vector<16x32xf32>
    %23 = arith.mulf %22, %5 : vector<16x32xf32>
    %24 = arith.addf %19, %23 : vector<16x32xf32>
    %c1 = arith.constant 1 : index
    %c0_16 = arith.constant 0 : index
    %c0_17 = arith.constant 0 : index
    %c0_18 = arith.constant 0 : index
    %25 = vector.load %arg4[%c1, %c0_16, %c0_17, %c0_18] : memref<5x4x2x32xf32, #tpu.memory_space<vmem>>, vector<1x1x1x32xf32>
    %26 = vector.shape_cast %25 : vector<1x1x1x32xf32> to vector<1x32xf32>
    %27 = vector.broadcast %26 : vector<1x32xf32> to vector<16x32xf32>
    %28 = arith.mulf %27, %8 : vector<16x32xf32>
    %29 = arith.addf %24, %28 : vector<16x32xf32>
    %c2 = arith.constant 2 : index
    %c0_19 = arith.constant 0 : index
    %c0_20 = arith.constant 0 : index
    %c0_21 = arith.constant 0 : index
    %30 = vector.load %arg4[%c2, %c0_19, %c0_20, %c0_21] : memref<5x4x2x32xf32, #tpu.memory_space<vmem>>, vector<1x1x1x32xf32>
    %31 = vector.shape_cast %30 : vector<1x1x1x32xf32> to vector<1x32xf32>
    %32 = vector.broadcast %31 : vector<1x32xf32> to vector<16x32xf32>
    %33 = arith.mulf %32, %11 : vector<16x32xf32>
    %34 = arith.addf %29, %33 : vector<16x32xf32>
    %c3 = arith.constant 3 : index
    %c0_22 = arith.constant 0 : index
    %c0_23 = arith.constant 0 : index
    %c0_24 = arith.constant 0 : index
    %35 = vector.load %arg4[%c3, %c0_22, %c0_23, %c0_24] : memref<5x4x2x32xf32, #tpu.memory_space<vmem>>, vector<1x1x1x32xf32>
    %36 = vector.shape_cast %35 : vector<1x1x1x32xf32> to vector<1x32xf32>
    %37 = vector.broadcast %36 : vector<1x32xf32> to vector<16x32xf32>
    %38 = arith.mulf %37, %14 : vector<16x32xf32>
    %39 = arith.addf %34, %38 : vector<16x32xf32>
    %cst_25 = arith.constant 0.000000e+00 : f32
    %40 = vector.broadcast %cst_25 : f32 to vector<16x32xf32>
    %c4_26 = arith.constant 4 : index
    %c0_27 = arith.constant 0 : index
    %c1_28 = arith.constant 1 : index
    %c0_29 = arith.constant 0 : index
    %41 = vector.load %arg4[%c4_26, %c0_27, %c1_28, %c0_29] : memref<5x4x2x32xf32, #tpu.memory_space<vmem>>, vector<1x1x1x32xf32>
    %42 = vector.shape_cast %41 : vector<1x1x1x32xf32> to vector<1x32xf32>
    %43 = vector.broadcast %42 : vector<1x32xf32> to vector<16x32xf32>
    %44 = arith.addf %40, %43 : vector<16x32xf32>
    %c0_30 = arith.constant 0 : index
    %c0_31 = arith.constant 0 : index
    %c1_32 = arith.constant 1 : index
    %c0_33 = arith.constant 0 : index
    %45 = vector.load %arg4[%c0_30, %c0_31, %c1_32, %c0_33] : memref<5x4x2x32xf32, #tpu.memory_space<vmem>>, vector<1x1x1x32xf32>
    %46 = vector.shape_cast %45 : vector<1x1x1x32xf32> to vector<1x32xf32>
    %47 = vector.broadcast %46 : vector<1x32xf32> to vector<16x32xf32>
    %48 = arith.mulf %47, %5 : vector<16x32xf32>
    %49 = arith.addf %44, %48 : vector<16x32xf32>
    %c1_34 = arith.constant 1 : index
    %c0_35 = arith.constant 0 : index
    %c1_36 = arith.constant 1 : index
    %c0_37 = arith.constant 0 : index
    %50 = vector.load %arg4[%c1_34, %c0_35, %c1_36, %c0_37] : memref<5x4x2x32xf32, #tpu.memory_space<vmem>>, vector<1x1x1x32xf32>
    %51 = vector.shape_cast %50 : vector<1x1x1x32xf32> to vector<1x32xf32>
    %52 = vector.broadcast %51 : vector<1x32xf32> to vector<16x32xf32>
    %53 = arith.mulf %52, %8 : vector<16x32xf32>
    %54 = arith.addf %49, %53 : vector<16x32xf32>
    %c2_38 = arith.constant 2 : index
    %c0_39 = arith.constant 0 : index
    %c1_40 = arith.constant 1 : index
    %c0_41 = arith.constant 0 : index
    %55 = vector.load %arg4[%c2_38, %c0_39, %c1_40, %c0_41] : memref<5x4x2x32xf32, #tpu.memory_space<vmem>>, vector<1x1x1x32xf32>
    %56 = vector.shape_cast %55 : vector<1x1x1x32xf32> to vector<1x32xf32>
    %57 = vector.broadcast %56 : vector<1x32xf32> to vector<16x32xf32>
    %58 = arith.mulf %57, %11 : vector<16x32xf32>
    %59 = arith.addf %54, %58 : vector<16x32xf32>
    %c3_42 = arith.constant 3 : index
    %c0_43 = arith.constant 0 : index
    %c1_44 = arith.constant 1 : index
    %c0_45 = arith.constant 0 : index
    %60 = vector.load %arg4[%c3_42, %c0_43, %c1_44, %c0_45] : memref<5x4x2x32xf32, #tpu.memory_space<vmem>>, vector<1x1x1x32xf32>
    %61 = vector.shape_cast %60 : vector<1x1x1x32xf32> to vector<1x32xf32>
    %62 = vector.broadcast %61 : vector<1x32xf32> to vector<16x32xf32>
    %63 = arith.mulf %62, %14 : vector<16x32xf32>
    %64 = arith.addf %59, %63 : vector<16x32xf32>
    %65 = tpu.concatenate %39, %64 in 1 : vector<16x32xf32>, vector<16x32xf32> -> vector<16x64xf32>
    %c0_46 = arith.constant 0 : index
    %c0_47 = arith.constant 0 : index
    %c0_48 = arith.constant 0 : index
    %c0_49 = arith.constant 0 : index
    %66 = vector.load %arg5[%c0_46, %c0_47, %c0_48, %c0_49] : memref<1x4x16x64xf32, #tpu.memory_space<vmem>>, vector<1x1x16x64xf32>
    %67 = vector.shape_cast %66 : vector<1x1x16x64xf32> to vector<16x64xf32>
    %68 = vector.shape_cast %65 : vector<16x64xf32> to vector<1x1x16x64xf32>
    tpu.vector_store %arg5[%c0_46, %c0_47, %c0_48, %c0_49], %68 {strides = array<i32>} : memref<1x4x16x64xf32, #tpu.memory_space<vmem>>, vector<1x1x16x64xf32>,
    %cst_50 = arith.constant 0.000000e+00 : f32
    %69 = vector.broadcast %cst_50 : f32 to vector<16x32xf32>
    %c4_51 = arith.constant 4 : index
    %c1_52 = arith.constant 1 : index
    %c0_53 = arith.constant 0 : index
    %c0_54 = arith.constant 0 : index
    %70 = vector.load %arg4[%c4_51, %c1_52, %c0_53, %c0_54] : memref<5x4x2x32xf32, #tpu.memory_space<vmem>>, vector<1x1x1x32xf32>
    %71 = vector.shape_cast %70 : vector<1x1x1x32xf32> to vector<1x32xf32>
    %72 = vector.broadcast %71 : vector<1x32xf32> to vector<16x32xf32>
    %73 = arith.addf %69, %72 : vector<16x32xf32>
    %c0_55 = arith.constant 0 : index
    %c1_56 = arith.constant 1 : index
    %c0_57 = arith.constant 0 : index
    %c0_58 = arith.constant 0 : index
    %74 = vector.load %arg4[%c0_55, %c1_56, %c0_57, %c0_58] : memref<5x4x2x32xf32, #tpu.memory_space<vmem>>, vector<1x1x1x32xf32>
    %75 = vector.shape_cast %74 : vector<1x1x1x32xf32> to vector<1x32xf32>
    %76 = vector.broadcast %75 : vector<1x32xf32> to vector<16x32xf32>
    %77 = arith.mulf %76, %5 : vector<16x32xf32>
    %78 = arith.addf %73, %77 : vector<16x32xf32>
    %c1_59 = arith.constant 1 : index
    %c1_60 = arith.constant 1 : index
    %c0_61 = arith.constant 0 : index
    %c0_62 = arith.constant 0 : index
    %79 = vector.load %arg4[%c1_59, %c1_60, %c0_61, %c0_62] : memref<5x4x2x32xf32, #tpu.memory_space<vmem>>, vector<1x1x1x32xf32>
    %80 = vector.shape_cast %79 : vector<1x1x1x32xf32> to vector<1x32xf32>
    %81 = vector.broadcast %80 : vector<1x32xf32> to vector<16x32xf32>
    %82 = arith.mulf %81, %8 : vector<16x32xf32>
    %83 = arith.addf %78, %82 : vector<16x32xf32>
    %c2_63 = arith.constant 2 : index
    %c1_64 = arith.constant 1 : index
    %c0_65 = arith.constant 0 : index
    %c0_66 = arith.constant 0 : index
    %84 = vector.load %arg4[%c2_63, %c1_64, %c0_65, %c0_66] : memref<5x4x2x32xf32, #tpu.memory_space<vmem>>, vector<1x1x1x32xf32>
    %85 = vector.shape_cast %84 : vector<1x1x1x32xf32> to vector<1x32xf32>
    %86 = vector.broadcast %85 : vector<1x32xf32> to vector<16x32xf32>
    %87 = arith.mulf %86, %11 : vector<16x32xf32>
    %88 = arith.addf %83, %87 : vector<16x32xf32>
    %c3_67 = arith.constant 3 : index
    %c1_68 = arith.constant 1 : index
    %c0_69 = arith.constant 0 : index
    %c0_70 = arith.constant 0 : index
    %89 = vector.load %arg4[%c3_67, %c1_68, %c0_69, %c0_70] : memref<5x4x2x32xf32, #tpu.memory_space<vmem>>, vector<1x1x1x32xf32>
    %90 = vector.shape_cast %89 : vector<1x1x1x32xf32> to vector<1x32xf32>
    %91 = vector.broadcast %90 : vector<1x32xf32> to vector<16x32xf32>
    %92 = arith.mulf %91, %14 : vector<16x32xf32>
    %93 = arith.addf %88, %92 : vector<16x32xf32>
    %cst_71 = arith.constant 0.000000e+00 : f32
    %94 = vector.broadcast %cst_71 : f32 to vector<16x32xf32>
    %c4_72 = arith.constant 4 : index
    %c1_73 = arith.constant 1 : index
    %c1_74 = arith.constant 1 : index
    %c0_75 = arith.constant 0 : index
    %95 = vector.load %arg4[%c4_72, %c1_73, %c1_74, %c0_75] : memref<5x4x2x32xf32, #tpu.memory_space<vmem>>, vector<1x1x1x32xf32>
    %96 = vector.shape_cast %95 : vector<1x1x1x32xf32> to vector<1x32xf32>
    %97 = vector.broadcast %96 : vector<1x32xf32> to vector<16x32xf32>
    %98 = arith.addf %94, %97 : vector<16x32xf32>
    %c0_76 = arith.constant 0 : index
    %c1_77 = arith.constant 1 : index
    %c1_78 = arith.constant 1 : index
    %c0_79 = arith.constant 0 : index
    %99 = vector.load %arg4[%c0_76, %c1_77, %c1_78, %c0_79] : memref<5x4x2x32xf32, #tpu.memory_space<vmem>>, vector<1x1x1x32xf32>
    %100 = vector.shape_cast %99 : vector<1x1x1x32xf32> to vector<1x32xf32>
    %101 = vector.broadcast %100 : vector<1x32xf32> to vector<16x32xf32>
    %102 = arith.mulf %101, %5 : vector<16x32xf32>
    %103 = arith.addf %98, %102 : vector<16x32xf32>
    %c1_80 = arith.constant 1 : index
    %c1_81 = arith.constant 1 : index
    %c1_82 = arith.constant 1 : index
    %c0_83 = arith.constant 0 : index
    %104 = vector.load %arg4[%c1_80, %c1_81, %c1_82, %c0_83] : memref<5x4x2x32xf32, #tpu.memory_space<vmem>>, vector<1x1x1x32xf32>
    %105 = vector.shape_cast %104 : vector<1x1x1x32xf32> to vector<1x32xf32>
    %106 = vector.broadcast %105 : vector<1x32xf32> to vector<16x32xf32>
    %107 = arith.mulf %106, %8 : vector<16x32xf32>
    %108 = arith.addf %103, %107 : vector<16x32xf32>
    %c2_84 = arith.constant 2 : index
    %c1_85 = arith.constant 1 : index
    %c1_86 = arith.constant 1 : index
    %c0_87 = arith.constant 0 : index
    %109 = vector.load %arg4[%c2_84, %c1_85, %c1_86, %c0_87] : memref<5x4x2x32xf32, #tpu.memory_space<vmem>>, vector<1x1x1x32xf32>
    %110 = vector.shape_cast %109 : vector<1x1x1x32xf32> to vector<1x32xf32>
    %111 = vector.broadcast %110 : vector<1x32xf32> to vector<16x32xf32>
    %112 = arith.mulf %111, %11 : vector<16x32xf32>
    %113 = arith.addf %108, %112 : vector<16x32xf32>
    %c3_88 = arith.constant 3 : index
    %c1_89 = arith.constant 1 : index
    %c1_90 = arith.constant 1 : index
    %c0_91 = arith.constant 0 : index
    %114 = vector.load %arg4[%c3_88, %c1_89, %c1_90, %c0_91] : memref<5x4x2x32xf32, #tpu.memory_space<vmem>>, vector<1x1x1x32xf32>
    %115 = vector.shape_cast %114 : vector<1x1x1x32xf32> to vector<1x32xf32>
    %116 = vector.broadcast %115 : vector<1x32xf32> to vector<16x32xf32>
    %117 = arith.mulf %116, %14 : vector<16x32xf32>
    %118 = arith.addf %113, %117 : vector<16x32xf32>
    %119 = tpu.concatenate %93, %118 in 1 : vector<16x32xf32>, vector<16x32xf32> -> vector<16x64xf32>
    %c0_92 = arith.constant 0 : index
    %c1_93 = arith.constant 1 : index
    %c0_94 = arith.constant 0 : index
    %c0_95 = arith.constant 0 : index
    %120 = vector.load %arg5[%c0_92, %c1_93, %c0_94, %c0_95] : memref<1x4x16x64xf32, #tpu.memory_space<vmem>>, vector<1x1x16x64xf32>
    %121 = vector.shape_cast %120 : vector<1x1x16x64xf32> to vector<16x64xf32>
    %122 = vector.shape_cast %119 : vector<16x64xf32> to vector<1x1x16x64xf32>
    tpu.vector_store %arg5[%c0_92, %c1_93, %c0_94, %c0_95], %122 {strides = array<i32>} : memref<1x4x16x64xf32, #tpu.memory_space<vmem>>, vector<1x1x16x64xf32>,
    %cst_96 = arith.constant 0.000000e+00 : f32
    %123 = vector.broadcast %cst_96 : f32 to vector<16x32xf32>
    %c4_97 = arith.constant 4 : index
    %c2_98 = arith.constant 2 : index
    %c0_99 = arith.constant 0 : index
    %c0_100 = arith.constant 0 : index
    %124 = vector.load %arg4[%c4_97, %c2_98, %c0_99, %c0_100] : memref<5x4x2x32xf32, #tpu.memory_space<vmem>>, vector<1x1x1x32xf32>
    %125 = vector.shape_cast %124 : vector<1x1x1x32xf32> to vector<1x32xf32>
    %126 = vector.broadcast %125 : vector<1x32xf32> to vector<16x32xf32>
    %127 = arith.addf %123, %126 : vector<16x32xf32>
    %c0_101 = arith.constant 0 : index
    %c2_102 = arith.constant 2 : index
    %c0_103 = arith.constant 0 : index
    %c0_104 = arith.constant 0 : index
    %128 = vector.load %arg4[%c0_101, %c2_102, %c0_103, %c0_104] : memref<5x4x2x32xf32, #tpu.memory_space<vmem>>, vector<1x1x1x32xf32>
    %129 = vector.shape_cast %128 : vector<1x1x1x32xf32> to vector<1x32xf32>
    %130 = vector.broadcast %129 : vector<1x32xf32> to vector<16x32xf32>
    %131 = arith.mulf %130, %5 : vector<16x32xf32>
    %132 = arith.addf %127, %131 : vector<16x32xf32>
    %c1_105 = arith.constant 1 : index
    %c2_106 = arith.constant 2 : index
    %c0_107 = arith.constant 0 : index
    %c0_108 = arith.constant 0 : index
    %133 = vector.load %arg4[%c1_105, %c2_106, %c0_107, %c0_108] : memref<5x4x2x32xf32, #tpu.memory_space<vmem>>, vector<1x1x1x32xf32>
    %134 = vector.shape_cast %133 : vector<1x1x1x32xf32> to vector<1x32xf32>
    %135 = vector.broadcast %134 : vector<1x32xf32> to vector<16x32xf32>
    %136 = arith.mulf %135, %8 : vector<16x32xf32>
    %137 = arith.addf %132, %136 : vector<16x32xf32>
    %c2_109 = arith.constant 2 : index
    %c2_110 = arith.constant 2 : index
    %c0_111 = arith.constant 0 : index
    %c0_112 = arith.constant 0 : index
    %138 = vector.load %arg4[%c2_109, %c2_110, %c0_111, %c0_112] : memref<5x4x2x32xf32, #tpu.memory_space<vmem>>, vector<1x1x1x32xf32>
    %139 = vector.shape_cast %138 : vector<1x1x1x32xf32> to vector<1x32xf32>
    %140 = vector.broadcast %139 : vector<1x32xf32> to vector<16x32xf32>
    %141 = arith.mulf %140, %11 : vector<16x32xf32>
    %142 = arith.addf %137, %141 : vector<16x32xf32>
    %c3_113 = arith.constant 3 : index
    %c2_114 = arith.constant 2 : index
    %c0_115 = arith.constant 0 : index
    %c0_116 = arith.constant 0 : index
    %143 = vector.load %arg4[%c3_113, %c2_114, %c0_115, %c0_116] : memref<5x4x2x32xf32, #tpu.memory_space<vmem>>, vector<1x1x1x32xf32>
    %144 = vector.shape_cast %143 : vector<1x1x1x32xf32> to vector<1x32xf32>
    %145 = vector.broadcast %144 : vector<1x32xf32> to vector<16x32xf32>
    %146 = arith.mulf %145, %14 : vector<16x32xf32>
    %147 = arith.addf %142, %146 : vector<16x32xf32>
    %cst_117 = arith.constant 0.000000e+00 : f32
    %148 = vector.broadcast %cst_117 : f32 to vector<16x32xf32>
    %c4_118 = arith.constant 4 : index
    %c2_119 = arith.constant 2 : index
    %c1_120 = arith.constant 1 : index
    %c0_121 = arith.constant 0 : index
    %149 = vector.load %arg4[%c4_118, %c2_119, %c1_120, %c0_121] : memref<5x4x2x32xf32, #tpu.memory_space<vmem>>, vector<1x1x1x32xf32>
    %150 = vector.shape_cast %149 : vector<1x1x1x32xf32> to vector<1x32xf32>
    %151 = vector.broadcast %150 : vector<1x32xf32> to vector<16x32xf32>
    %152 = arith.addf %148, %151 : vector<16x32xf32>
    %c0_122 = arith.constant 0 : index
    %c2_123 = arith.constant 2 : index
    %c1_124 = arith.constant 1 : index
    %c0_125 = arith.constant 0 : index
    %153 = vector.load %arg4[%c0_122, %c2_123, %c1_124, %c0_125] : memref<5x4x2x32xf32, #tpu.memory_space<vmem>>, vector<1x1x1x32xf32>
    %154 = vector.shape_cast %153 : vector<1x1x1x32xf32> to vector<1x32xf32>
    %155 = vector.broadcast %154 : vector<1x32xf32> to vector<16x32xf32>
    %156 = arith.mulf %155, %5 : vector<16x32xf32>
    %157 = arith.addf %152, %156 : vector<16x32xf32>
    %c1_126 = arith.constant 1 : index
    %c2_127 = arith.constant 2 : index
    %c1_128 = arith.constant 1 : index
    %c0_129 = arith.constant 0 : index
    %158 = vector.load %arg4[%c1_126, %c2_127, %c1_128, %c0_129] : memref<5x4x2x32xf32, #tpu.memory_space<vmem>>, vector<1x1x1x32xf32>
    %159 = vector.shape_cast %158 : vector<1x1x1x32xf32> to vector<1x32xf32>
    %160 = vector.broadcast %159 : vector<1x32xf32> to vector<16x32xf32>
    %161 = arith.mulf %160, %8 : vector<16x32xf32>
    %162 = arith.addf %157, %161 : vector<16x32xf32>
    %c2_130 = arith.constant 2 : index
    %c2_131 = arith.constant 2 : index
    %c1_132 = arith.constant 1 : index
    %c0_133 = arith.constant 0 : index
    %163 = vector.load %arg4[%c2_130, %c2_131, %c1_132, %c0_133] : memref<5x4x2x32xf32, #tpu.memory_space<vmem>>, vector<1x1x1x32xf32>
    %164 = vector.shape_cast %163 : vector<1x1x1x32xf32> to vector<1x32xf32>
    %165 = vector.broadcast %164 : vector<1x32xf32> to vector<16x32xf32>
    %166 = arith.mulf %165, %11 : vector<16x32xf32>
    %167 = arith.addf %162, %166 : vector<16x32xf32>
    %c3_134 = arith.constant 3 : index
    %c2_135 = arith.constant 2 : index
    %c1_136 = arith.constant 1 : index
    %c0_137 = arith.constant 0 : index
    %168 = vector.load %arg4[%c3_134, %c2_135, %c1_136, %c0_137] : memref<5x4x2x32xf32, #tpu.memory_space<vmem>>, vector<1x1x1x32xf32>
    %169 = vector.shape_cast %168 : vector<1x1x1x32xf32> to vector<1x32xf32>
    %170 = vector.broadcast %169 : vector<1x32xf32> to vector<16x32xf32>
    %171 = arith.mulf %170, %14 : vector<16x32xf32>
    %172 = arith.addf %167, %171 : vector<16x32xf32>
    %173 = tpu.concatenate %147, %172 in 1 : vector<16x32xf32>, vector<16x32xf32> -> vector<16x64xf32>
    %c0_138 = arith.constant 0 : index
    %c2_139 = arith.constant 2 : index
    %c0_140 = arith.constant 0 : index
    %c0_141 = arith.constant 0 : index
    %174 = vector.load %arg5[%c0_138, %c2_139, %c0_140, %c0_141] : memref<1x4x16x64xf32, #tpu.memory_space<vmem>>, vector<1x1x16x64xf32>
    %175 = vector.shape_cast %174 : vector<1x1x16x64xf32> to vector<16x64xf32>
    %176 = vector.shape_cast %173 : vector<16x64xf32> to vector<1x1x16x64xf32>
    tpu.vector_store %arg5[%c0_138, %c2_139, %c0_140, %c0_141], %176 {strides = array<i32>} : memref<1x4x16x64xf32, #tpu.memory_space<vmem>>, vector<1x1x16x64xf32>,
    %cst_142 = arith.constant 0.000000e+00 : f32
    %177 = vector.broadcast %cst_142 : f32 to vector<16x32xf32>
    %c4_143 = arith.constant 4 : index
    %c3_144 = arith.constant 3 : index
    %c0_145 = arith.constant 0 : index
    %c0_146 = arith.constant 0 : index
    %178 = vector.load %arg4[%c4_143, %c3_144, %c0_145, %c0_146] : memref<5x4x2x32xf32, #tpu.memory_space<vmem>>, vector<1x1x1x32xf32>
    %179 = vector.shape_cast %178 : vector<1x1x1x32xf32> to vector<1x32xf32>
    %180 = vector.broadcast %179 : vector<1x32xf32> to vector<16x32xf32>
    %181 = arith.addf %177, %180 : vector<16x32xf32>
    %c0_147 = arith.constant 0 : index
    %c3_148 = arith.constant 3 : index
    %c0_149 = arith.constant 0 : index
    %c0_150 = arith.constant 0 : index
    %182 = vector.load %arg4[%c0_147, %c3_148, %c0_149, %c0_150] : memref<5x4x2x32xf32, #tpu.memory_space<vmem>>, vector<1x1x1x32xf32>
    %183 = vector.shape_cast %182 : vector<1x1x1x32xf32> to vector<1x32xf32>
    %184 = vector.broadcast %183 : vector<1x32xf32> to vector<16x32xf32>
    %185 = arith.mulf %184, %5 : vector<16x32xf32>
    %186 = arith.addf %181, %185 : vector<16x32xf32>
    %c1_151 = arith.constant 1 : index
    %c3_152 = arith.constant 3 : index
    %c0_153 = arith.constant 0 : index
    %c0_154 = arith.constant 0 : index
    %187 = vector.load %arg4[%c1_151, %c3_152, %c0_153, %c0_154] : memref<5x4x2x32xf32, #tpu.memory_space<vmem>>, vector<1x1x1x32xf32>
    %188 = vector.shape_cast %187 : vector<1x1x1x32xf32> to vector<1x32xf32>
    %189 = vector.broadcast %188 : vector<1x32xf32> to vector<16x32xf32>
    %190 = arith.mulf %189, %8 : vector<16x32xf32>
    %191 = arith.addf %186, %190 : vector<16x32xf32>
    %c2_155 = arith.constant 2 : index
    %c3_156 = arith.constant 3 : index
    %c0_157 = arith.constant 0 : index
    %c0_158 = arith.constant 0 : index
    %192 = vector.load %arg4[%c2_155, %c3_156, %c0_157, %c0_158] : memref<5x4x2x32xf32, #tpu.memory_space<vmem>>, vector<1x1x1x32xf32>
    %193 = vector.shape_cast %192 : vector<1x1x1x32xf32> to vector<1x32xf32>
    %194 = vector.broadcast %193 : vector<1x32xf32> to vector<16x32xf32>
    %195 = arith.mulf %194, %11 : vector<16x32xf32>
    %196 = arith.addf %191, %195 : vector<16x32xf32>
    %c3_159 = arith.constant 3 : index
    %c3_160 = arith.constant 3 : index
    %c0_161 = arith.constant 0 : index
    %c0_162 = arith.constant 0 : index
    %197 = vector.load %arg4[%c3_159, %c3_160, %c0_161, %c0_162] : memref<5x4x2x32xf32, #tpu.memory_space<vmem>>, vector<1x1x1x32xf32>
    %198 = vector.shape_cast %197 : vector<1x1x1x32xf32> to vector<1x32xf32>
    %199 = vector.broadcast %198 : vector<1x32xf32> to vector<16x32xf32>
    %200 = arith.mulf %199, %14 : vector<16x32xf32>
    %201 = arith.addf %196, %200 : vector<16x32xf32>
    %cst_163 = arith.constant 0.000000e+00 : f32
    %202 = vector.broadcast %cst_163 : f32 to vector<16x32xf32>
    %c4_164 = arith.constant 4 : index
    %c3_165 = arith.constant 3 : index
    %c1_166 = arith.constant 1 : index
    %c0_167 = arith.constant 0 : index
    %203 = vector.load %arg4[%c4_164, %c3_165, %c1_166, %c0_167] : memref<5x4x2x32xf32, #tpu.memory_space<vmem>>, vector<1x1x1x32xf32>
    %204 = vector.shape_cast %203 : vector<1x1x1x32xf32> to vector<1x32xf32>
    %205 = vector.broadcast %204 : vector<1x32xf32> to vector<16x32xf32>
    %206 = arith.addf %202, %205 : vector<16x32xf32>
    %c0_168 = arith.constant 0 : index
    %c3_169 = arith.constant 3 : index
    %c1_170 = arith.constant 1 : index
    %c0_171 = arith.constant 0 : index
    %207 = vector.load %arg4[%c0_168, %c3_169, %c1_170, %c0_171] : memref<5x4x2x32xf32, #tpu.memory_space<vmem>>, vector<1x1x1x32xf32>
    %208 = vector.shape_cast %207 : vector<1x1x1x32xf32> to vector<1x32xf32>
    %209 = vector.broadcast %208 : vector<1x32xf32> to vector<16x32xf32>
    %210 = arith.mulf %209, %5 : vector<16x32xf32>
    %211 = arith.addf %206, %210 : vector<16x32xf32>
    %c1_172 = arith.constant 1 : index
    %c3_173 = arith.constant 3 : index
    %c1_174 = arith.constant 1 : index
    %c0_175 = arith.constant 0 : index
    %212 = vector.load %arg4[%c1_172, %c3_173, %c1_174, %c0_175] : memref<5x4x2x32xf32, #tpu.memory_space<vmem>>, vector<1x1x1x32xf32>
    %213 = vector.shape_cast %212 : vector<1x1x1x32xf32> to vector<1x32xf32>
    %214 = vector.broadcast %213 : vector<1x32xf32> to vector<16x32xf32>
    %215 = arith.mulf %214, %8 : vector<16x32xf32>
    %216 = arith.addf %211, %215 : vector<16x32xf32>
    %c2_176 = arith.constant 2 : index
    %c3_177 = arith.constant 3 : index
    %c1_178 = arith.constant 1 : index
    %c0_179 = arith.constant 0 : index
    %217 = vector.load %arg4[%c2_176, %c3_177, %c1_178, %c0_179] : memref<5x4x2x32xf32, #tpu.memory_space<vmem>>, vector<1x1x1x32xf32>
    %218 = vector.shape_cast %217 : vector<1x1x1x32xf32> to vector<1x32xf32>
    %219 = vector.broadcast %218 : vector<1x32xf32> to vector<16x32xf32>
    %220 = arith.mulf %219, %11 : vector<16x32xf32>
    %221 = arith.addf %216, %220 : vector<16x32xf32>
    %c3_180 = arith.constant 3 : index
    %c3_181 = arith.constant 3 : index
    %c1_182 = arith.constant 1 : index
    %c0_183 = arith.constant 0 : index
    %222 = vector.load %arg4[%c3_180, %c3_181, %c1_182, %c0_183] : memref<5x4x2x32xf32, #tpu.memory_space<vmem>>, vector<1x1x1x32xf32>
    %223 = vector.shape_cast %222 : vector<1x1x1x32xf32> to vector<1x32xf32>
    %224 = vector.broadcast %223 : vector<1x32xf32> to vector<16x32xf32>
    %225 = arith.mulf %224, %14 : vector<16x32xf32>
    %226 = arith.addf %221, %225 : vector<16x32xf32>
    %227 = tpu.concatenate %201, %226 in 1 : vector<16x32xf32>, vector<16x32xf32> -> vector<16x64xf32>
    %c0_184 = arith.constant 0 : index
    %c3_185 = arith.constant 3 : index
    %c0_186 = arith.constant 0 : index
    %c0_187 = arith.constant 0 : index
    %228 = vector.load %arg5[%c0_184, %c3_185, %c0_186, %c0_187] : memref<1x4x16x64xf32, #tpu.memory_space<vmem>>, vector<1x1x16x64xf32>
    %229 = vector.shape_cast %228 : vector<1x1x16x64xf32> to vector<16x64xf32>
    %230 = vector.shape_cast %227 : vector<16x64xf32> to vector<1x1x16x64xf32>
    tpu.vector_store %arg5[%c0_184, %c3_185, %c0_186, %c0_187], %230 {strides = array<i32>} : memref<1x4x16x64xf32, #tpu.memory_space<vmem>>, vector<1x1x16x64xf32>,
    return
  }
  func.func @transform_0(%arg0: i32, %arg1: i32) -> (i32, i32, i32, i32) {
    %c0_i32 = arith.constant 0 : i32
    %c0_i32_0 = arith.constant 0 : i32
    %c0_i32_1 = arith.constant 0 : i32
    return %arg0, %c0_i32, %arg1, %c0_i32_0 : i32, i32, i32, i32
  }
  func.func @transform_1(%arg0: i32, %arg1: i32) -> (i32, i32) {
    %c0_i32 = arith.constant 0 : i32
    %c0_i32_0 = arith.constant 0 : i32
    %c0_i32_1 = arith.constant 0 : i32
    return %c0_i32, %c0_i32_0 : i32, i32
  }
  func.func @transform_2(%arg0: i32, %arg1: i32) -> (i32, i32, i32, i32) {
    %c0_i32 = arith.constant 0 : i32
    %c0_i32_0 = arith.constant 0 : i32
    %c0_i32_1 = arith.constant 0 : i32
    %c0_i32_2 = arith.constant 0 : i32
    %c0_i32_3 = arith.constant 0 : i32
    return %c0_i32, %c0_i32_0, %c0_i32_1, %c0_i32_2 : i32, i32, i32, i32
  }
  func.func @transform_3(%arg0: i32, %arg1: i32) -> (i32, i32, i32, i32) {
    %c0_i32 = arith.constant 0 : i32
    %c0_i32_0 = arith.constant 0 : i32
    %c0_i32_1 = arith.constant 0 : i32
    return %arg0, %c0_i32, %arg1, %c0_i32_0 : i32, i32, i32, i32
  }
}

</mosaic_0001>

<bundles_post_ra>
// kernel: upsample_conv_transpose2d.1
= control target key start
LH: loop header
LB: loop body
LE: loop exit
PB: predicated region body
PF: predicated region fallthrough
CT: control target
= control target key end

     0   :  { %s887_s12 = smov 0   ;;  %s889_s13 = smov 0   ;;  %s1285_s0 = inlined_call_operand.vmem [shape: f32[2,4,16,16], index: 0, kind: input, shape index: {}]   ;;  %s1286_s1 = inlined_call_operand.vmem [shape: f32[16,32], index: 1, kind: input, shape index: {}]   ;;  %s1287_s2 = inlined_call_operand.vmem [shape: f32[5,4,2,32], index: 2, kind: input, shape index: {}]   ;;  %s1288_s3 = inlined_call_operand.vmem [shape: f32[2,4,16,64], index: 3, kind: output, shape index: {}]  }
   0x1   :  { %s891_s14 = smov 0  }
   0x2 LB: > { %s25_s15 = sadd.s32 1, %s860_s13  ;;  %p716_p0 = scmp.ge.s32.totalorder %s864_s14, 1  ;;  %s864_s14 = sphi %s891_s14, %s13_s14   ;;  %s860_s13 = sphi %s889_s13, %s1290_s13   ;;  %s856_s12 = sphi %s887_s12, %s1289_s12  }
   0x3   : > { %p27_p1 = scmp.ge.s32.totalorder %s25_s15, 2  ;;  %p158_p2 = scmp.lt.s32.totalorder %s864_s14, 3 }
   0x5   : > { %s1292_s15 = smov (%p27_p1, %s25_s15), 0  ;;  %p159_p3 = pnand %p716_p0, %p158_p2 }
   0x6   : > { %p191_p4 = scmp.lt.s32.totalorder (!%p159_p3), %s856_s12, 1  ;;  %s866_s9 = smov (!%p159_p3), 32  }
   0x7   : > { %162 = sbr.rel (%p159_p3) target bundleno = 289 (0x121), region = 32 }
   0xc   : > { %v219_v0 = vld [vmem:[%s1286_s1 + $0x8] sm:$0xff]  ;;  %v218_v1 = vld [vmem:[%s1286_s1] sm:$0xff]  ;;  %s1294_s12 = smov (!%p191_p4, %s856_s12), 1  ;;  %vm220_vm0 = vcmask 130048   ;;  %v1011_v28 = vld [vmem:[%s1287_s2 + $0x15] ss:$0 sm:$0xff] }
   0xd   : > { %299 = vmatpush.msra.mxu2 %v219_v0  ;;  %241 = vmatpush.msra.mxu0 %v219_v0  ;;  %s775_s20 = sshll.u32 %s1294_s12, 6  ;;  %v930_v10 = vld [vmem:[%s1287_s2 + $0x5] ss:$0 sm:$0xff]  ;;  %v935_v11 = vld [vmem:[%s1287_s2 + $0x3] ss:$0 sm:$0xff]  ;;  %vm403_vm1 = vcmask 261120  }
   0xe   : > { %328 = vmatpush.msra.mxu3 %v219_v0  ;;  %270 = vmatpush.msra.mxu1 %v219_v0  ;;  %s198_s23 = scalar_lea.vmem %s1285_s0, %s775_s20  ;;  %v940_v12 = vld [vmem:[%s1287_s2 + $0x1] ss:$0 sm:$0xff]  ;;  %v945_v13 = vld [vmem:[%s1287_s2 + $0x25] ss:$0 sm:$0xff]  ;;  %v950_v14 = vld [vmem:[%s1287_s2 + $0xd] ss:$0 sm:$0xff]  ;;  %s208_s18 = scalar_lea.vmem %s1288_s3, %s775_s20 }
   0xf   : > { %300 = vmatpush.msra.mxu2 %v218_v1  ;;  %242 = vmatpush.msra.mxu0 %v218_v1  ;;  %v214_v2 = vld [vmem:[%s198_s23 + $0x20] sm:$0xff]  ;;  %v216_v4 = vld [vmem:[%s198_s23 + $0x30] sm:$0xff]  ;;  %v215_v6 = vld [vmem:[%s198_s23 + $0x28] sm:$0xff]  ;;  %vm406_vm2 = vcmask 523264  }
  0x10   : > { %329 = vmatpush.msra.mxu3 %v218_v1  ;;  %271 = vmatpush.msra.mxu1 %v218_v1  ;;  %v210_v3 = vld [vmem:[%s198_s23] sm:$0xff]  ;;  %v212_v5 = vld [vmem:[%s198_s23 + $0x10] sm:$0xff]  ;;  %v211_v7 = vld [vmem:[%s198_s23 + $0x8] sm:$0xff] }
  0x11   : > { %725 = vmatmul.msk.f32.vlgmr.msra.gmra.mxu2 %vm220_vm0, %v214_v2  ;;  %721 = vmatmul.msk.f32.vlgmr.msra.gmra.mxu0 %vm220_vm0, %v210_v3  ;;  %v217_v8 = vld [vmem:[%s198_s23 + $0x38] sm:$0xff]  ;;  %v955_v15 = vld [vmem:[%s1287_s2 + $0x7] ss:$0 sm:$0xff]  ;;  %v960_v16 = vld [vmem:[%s1287_s2 + $0xb] ss:$0 sm:$0xff] }
  0x12   : > { %727 = vmatmul.msk.f32.vlgmr.msra.gmra.mxu3 %vm220_vm0, %v216_v4  ;;  %723 = vmatmul.msk.f32.vlgmr.msra.gmra.mxu1 %vm220_vm0, %v212_v5  ;;  %v213_v9 = vld [vmem:[%s198_s23 + $0x18] sm:$0xff]  ;;  %v965_v17 = vld [vmem:[%s1287_s2 + $0x9] ss:$0 sm:$0xff]  ;;  %v970_v18 = vld [vmem:[%s1287_s2 + $0xf] ss:$0 sm:$0xff] }
  0x13   : > { %v975_v19 = vld [vmem:[%s1287_s2 + $0x23] ss:$0 sm:$0xff]  ;;  %v980_v20 = vld [vmem:[%s1287_s2 + $0x21] ss:$0 sm:$0xff]  ;;  %v985_v21 = vld [vmem:[%s1287_s2 + $0x27] ss:$0 sm:$0xff] }
  0x14   : > { %v992_v23 = vld [vmem:[%s1287_s2 + $0x4] ss:$0 sm:$0xff]  ;;  %v997_v24 = vld [vmem:[%s1287_s2 + $0xc] ss:$0 sm:$0xff]  ;;  %v1002_v25 = vld [vmem:[%s1287_s2 + $0x2] ss:$0 sm:$0xff] }
  0x15   : > { %v1018_v30 = vld [vmem:[%s1287_s2 + $0x13] ss:$0 sm:$0xff]  ;;  %v1027_v33 = vld [vmem:[%s1287_s2 + $0xa] ss:$0 sm:$0xff]  ;;  %v1040_v38 = vld [vmem:[%s1287_s2 + $0x24] ss:$0 sm:$0xff] }
  0x16   : > { %v1045_v39 = vld [vmem:[%s1287_s2 + $0x22] ss:$0 sm:$0xff]  ;;  %v1050_v40 = vld [vmem:[%s1287_s2 + $0x8] ss:$0 sm:$0xff]  ;;  %v1056_v42 = vld [vmem:[%s1287_s2 + $0x1d] ss:$0 sm:$0xff] }
  0x17   : > { %v1063_v45 = vld [vmem:[%s1287_s2 + $0x11] ss:$0 sm:$0xff]  ;;  %v1068_v46 = vld [vmem:[%s1287_s2 + $0x17] ss:$0 sm:$0xff]  ;;  %v1074_v48 = vld [vmem:[%s1287_s2 + $0x1b] ss:$0 sm:$0xff] }
  0x18   : > { %v1079_v49 = vld [vmem:[%s1287_s2 + $0x19] ss:$0 sm:$0xff]  ;;  %v1084_v50 = vld [vmem:[%s1287_s2 + $0x1f] ss:$0 sm:$0xff] }
  0x19   : > { %726 = vmatmul.msk.f32.gmra.mxu2 %vm220_vm0, %v215_v6  ;;  %722 = vmatmul.msk.f32.gmra.mxu0 %vm220_vm0, %v211_v7 }
  0x1a   : > { %728 = vmatmul.msk.f32.gmra.mxu3 %vm220_vm0, %v217_v8  ;;  %724 = vmatmul.msk.f32.gmra.mxu1 %vm220_vm0, %v213_v9 }
  0x8e   : > { %v987_v22 = vpop.f32.mrf.mxu0 }
  0x8f   : > { %v1004_v26 = vpop.f32.mrf.mxu1  ;;  %v518_v27 = vmul.f32 %v930_v10, %v987_v22  ;;  %v446_v29 = vmul.f32 %v935_v11, %v987_v22  ;;  %v373_v31 = vmul.f32 %v940_v12, %v987_v22  ;;  %v590_v32 = vmul.f32 %v955_v15, %v987_v22 }
  0x90   : > { %v524_v34 = vmul.f32 %v950_v14, %v1004_v26  ;;  %v452_v35 = vmul.f32 %v960_v16, %v1004_v26  ;;  %v379_v36 = vmul.f32 %v965_v17, %v1004_v26  ;;  %v596_v37 = vmul.f32 %v970_v18, %v1004_v26 }
  0x91   : > { %v520_v41 = vadd.f32 %v945_v13, %v518_v27  ;;  %v448_v43 = vadd.f32 %v975_v19, %v446_v29  ;;  %v375_v44 = vadd.f32 %v980_v20, %v373_v31  ;;  %v592_v47 = vadd.f32 %v985_v21, %v590_v32 }
  0x92   : > { %v1088_v51 = vmul.f32 %v997_v24, %v1004_v26  ;;  %v488_v52 = vmul.f32 %v992_v23, %v987_v22  ;;  %v416_v53 = vmul.f32 %v1002_v25, %v987_v22  ;;  %v1096_v57 = vmul.f32 %v1027_v33, %v1004_v26 }
  0x93   : > { %v526_v54 = vadd.f32 %v524_v34, %v520_v41  ;;  %v454_v55 = vadd.f32 %v452_v35, %v448_v43  ;;  %v381_v56 = vadd.f32 %v379_v36, %v375_v44  ;;  %v598_v59 = vadd.f32 %v596_v37, %v592_v47  ;;  %v825_v41 = vld [vmem:[%s1287_s2 + $0x14] ss:$0 sm:$0xff] }
  0x94   : > { %v1098_v58 = vpop.f32.mrf.mxu2  ;;  %v490_v60 = vadd.f32 %v1040_v38, %v488_v52  ;;  %v1102_v61 = vadd.f32 %v1045_v39, %v416_v53  ;;  %v1106_v62 = vmul.f32 %v1050_v40, %v1004_v26 }
  0x95   : > { %v1108_v63 = vpop.f32.mrf.mxu3  ;;  %v530_v0 = vmul.f32 %v1011_v28, %v1098_v58  ;;  %v458_v1 = vmul.f32 %v1018_v30, %v1098_v58  ;;  %v385_v2 = vmul.f32 %v1063_v45, %v1098_v58  ;;  %v602_v3 = vmul.f32 %v1068_v46, %v1098_v58 }
  0x96   : > { %v1118_v4 = vpop.f32.mrf.mxu0  ;;  %v536_v5 = vmul.f32 %v1056_v42, %v1108_v63  ;;  %v464_v6 = vmul.f32 %v1074_v48, %v1108_v63  ;;  %v391_v7 = vmul.f32 %v1079_v49, %v1108_v63  ;;  %v608_v8 = vmul.f32 %v1084_v50, %v1108_v63 }
  0x97   : > { %v1128_v9 = vpop.f32.mrf.mxu1  ;;  %v532_v27 = vadd.f32 %v530_v0, %v526_v54  ;;  %v460_v29 = vadd.f32 %v458_v1, %v454_v55  ;;  %v387_v31 = vadd.f32 %v385_v2, %v381_v56  ;;  %v519_v32 = vmul.f32 %v930_v10, %v1118_v4  ;;  %v826_v55 = vld [vmem:[%s1287_s2 + $0x1c] ss:$0 sm:$0xff]  ;;  %v833_v56 = vld [vmem:[%s1287_s2] ss:$0 sm:$0xff] }
  0x98   : > { %v525_v34 = vmul.f32 %v950_v14, %v1128_v9  ;;  %v447_v35 = vmul.f32 %v935_v11, %v1118_v4  ;;  %v453_v36 = vmul.f32 %v960_v16, %v1128_v9  ;;  %v374_v37 = vmul.f32 %v940_v12, %v1118_v4 }
  0x99   : > { %v538_v43 = vadd.f32 %v536_v5, %v532_v27  ;;  %v466_v44 = vadd.f32 %v464_v6, %v460_v29  ;;  %v393_v47 = vadd.f32 %v391_v7, %v387_v31  ;;  %v521_v10 = vadd.f32 %v945_v13, %v519_v32 }
  0x9a   : > { %v449_v14 = vadd.f32 %v975_v19, %v447_v35  ;;  %v376_v52 = vadd.f32 %v980_v20, %v374_v37  ;;  %v380_v11 = vmul.f32 %v965_v17, %v1128_v9  ;;  %v591_v16 = vmul.f32 %v955_v15, %v1118_v4 }
  0x9b   : > { %542 = vrot.lane.b32.xlu2 %v538_v43, %s866_s9  ;;  %470 = vrot.lane.b32.xlu1 %v466_v44, %s866_s9  ;;  %v527_v12 = vadd.f32 %v525_v34, %v521_v10  ;;  %v597_v53 = vmul.f32 %v970_v18, %v1128_v9  ;;  %v604_v13 = vadd.f32 %v602_v3, %v598_v59 }
  0x9c   : > { %397 = vrot.lane.b32.xlu0 %v393_v47, %s866_s9  ;;  %v1155_v19 = vpop.f32.mrf.mxu2  ;;  %v455_v20 = vadd.f32 %v453_v36, %v449_v14  ;;  %v382_v54 = vadd.f32 %v380_v11, %v376_v52  ;;  %v593_v17 = vadd.f32 %v985_v21, %v591_v16  ;;  %v502_v15 = vmul.f32 %v825_v41, %v1098_v58  ;;  %v832_v36 = vld [vmem:[%s1287_s2 + $0x20] ss:$0 sm:$0xff] }
  0x9d   : > { %v1165_v18 = vpop.f32.mrf.mxu3  ;;  %v531_v59 = vmul.f32 %v1011_v28, %v1155_v19  ;;  %v459_v0 = vmul.f32 %v1018_v30, %v1155_v19  ;;  %v386_v21 = vmul.f32 %v1063_v45, %v1155_v19  ;;  %v603_v1 = vmul.f32 %v1068_v46, %v1155_v19  ;;  %v830_v45 = vld [vmem:[%s1287_s2 + $0x12] ss:$0 sm:$0xff] }
  0x9e   : > { %v537_v2 = vmul.f32 %v1056_v42, %v1165_v18  ;;  %v465_v3 = vmul.f32 %v1074_v48, %v1165_v18  ;;  %v392_v5 = vmul.f32 %v1079_v49, %v1165_v18  ;;  %v599_v6 = vadd.f32 %v597_v53, %v593_v17  ;;  %v831_v48 = vld [vmem:[%s1287_s2 + $0x1a] ss:$0 sm:$0xff]  ;;  %v835_v49 = vld [vmem:[%s1287_s2 + $0x10] ss:$0 sm:$0xff] }
  0x9f   : > { %v533_v28 = vadd.f32 %v531_v59, %v527_v12  ;;  %v461_v7 = vadd.f32 %v459_v0, %v455_v20  ;;  %v388_v27 = vadd.f32 %v386_v21, %v382_v54  ;;  %v609_v30 = vmul.f32 %v1084_v50, %v1165_v18  ;;  %v837_v0 = vld [vmem:[%s1287_s2 + $0x26] ss:$0 sm:$0xff] }
  0xa0   : > { %v605_v46 = vadd.f32 %v603_v1, %v599_v6  ;;  %v509_v42 = vmul.f32 %v826_v55, %v1108_v63  ;;  %v497_v29 = vadd.f32 %v1088_v51, %v490_v60  ;;  %v343_v31 = vmul.f32 %v833_v56, %v987_v22  ;;  %v836_v51 = vld [vmem:[%s1287_s2 + $0x18] ss:$0 sm:$0xff] }
  0xa1   : > { %v539_v50 = vadd.f32 %v537_v2, %v533_v28  ;;  %v467_v32 = vadd.f32 %v465_v3, %v461_v7  ;;  %v394_v34 = vadd.f32 %v392_v5, %v388_v27  ;;  %v610_v35 = vadd.f32 %v608_v8, %v604_v13  ;;  %v841_v28 = vld [vmem:[%s1287_s2 + $0x1e] ss:$0 sm:$0xff] }
  0xa2   : > { %v611_v60 = vadd.f32 %v609_v30, %v605_v46  ;;  %v504_v37 = vadd.f32 %v502_v15, %v497_v29  ;;  %v496_v43 = vmul.f32 %v997_v24, %v1128_v9  ;;  %v503_v44 = vmul.f32 %v825_v41, %v1155_v19  ;;  %v839_v15 = vld [vmem:[%s1287_s2 + $0xe] ss:$0 sm:$0xff] }
  0xa3   : > { %544 = vrot.lane.b32.xlu2 %v539_v50, %s866_s9  ;;  %472 = vrot.lane.b32.xlu1 %v467_v32, %s866_s9  ;;  %v510_v8 = vmul.f32 %v826_v55, %v1165_v18  ;;  %v489_v47 = vmul.f32 %v992_v23, %v1118_v4  ;;  %v430_v10 = vmul.f32 %v830_v45, %v1098_v58 }
  0xa4   : > { %399 = vrot.lane.b32.xlu0 %v394_v34, %s866_s9  ;;  %v511_v14 = vadd.f32 %v509_v42, %v504_v37  ;;  %v437_v52 = vmul.f32 %v831_v48, %v1108_v63  ;;  %v425_v24 = vadd.f32 %v1096_v57, %v1102_v61  ;;  %v357_v41 = vmul.f32 %v835_v49, %v1098_v58  ;;  %v838_v57 = vld [vmem:[%s1287_s2 + $0x6] ss:$0 sm:$0xff] }
  0xa5   : > { %v491_v11 = vadd.f32 %v1040_v38, %v489_v47  ;;  %v364_v16 = vmul.f32 %v836_v51, %v1108_v63  ;;  %v345_v12 = vadd.f32 %v832_v36, %v343_v31  ;;  %v424_v23 = vmul.f32 %v1027_v33, %v1128_v9 }
  0xa6   : > { %v432_v53 = vadd.f32 %v430_v10, %v425_v24  ;;  %v431_v13 = vmul.f32 %v830_v45, %v1155_v19  ;;  %v438_v20 = vmul.f32 %v831_v48, %v1165_v18  ;;  %v417_v54 = vmul.f32 %v1002_v25, %v1118_v4 }
  0xa7   : > { %v498_v61 = vadd.f32 %v496_v43, %v491_v11  ;;  %v352_v38 = vadd.f32 %v1106_v62, %v345_v12  ;;  %v351_v17 = vmul.f32 %v1050_v40, %v1128_v9  ;;  %v358_v33 = vmul.f32 %v835_v49, %v1155_v19  ;;  %v840_v40 = vld [vmem:[%s1287_s2 + $0x16] ss:$0 sm:$0xff] }
  0xa8   : > { %v439_v55 = vadd.f32 %v437_v52, %v432_v53  ;;  %v419_v59 = vadd.f32 %v1045_v39, %v417_v54  ;;  %v344_v25 = vmul.f32 %v833_v56, %v1118_v4  ;;  %v561_v62 = vmul.f32 %v838_v57, %v1118_v4 }
  0xa9   : > { %v505_v21 = vadd.f32 %v503_v44, %v498_v61  ;;  %v359_v1 = vadd.f32 %v357_v41, %v352_v38  ;;  %v365_v2 = vmul.f32 %v836_v51, %v1165_v18  ;;  %v568_v3 = vmul.f32 %v839_v15, %v1128_v9 }
  0xaa   : > { %v426_v5 = vadd.f32 %v424_v23, %v419_v59  ;;  %v346_v39 = vadd.f32 %v832_v36, %v344_v25  ;;  %v563_v6 = vadd.f32 %v837_v0, %v561_v62  ;;  %v575_v56 = vmul.f32 %v840_v40, %v1155_v19 }
  0xab   : > { %616 = vrot.lane.b32.xlu1 %v611_v60, %s866_s9  ;;  %v512_v4 = vadd.f32 %v510_v8, %v505_v21  ;;  %v366_v7 = vadd.f32 %v364_v16, %v359_v1  ;;  %v560_v27 = vmul.f32 %v838_v57, %v987_v22  ;;  %v567_v30 = vmul.f32 %v839_v15, %v1004_v26 }
  0xac   : > { %614 = vrot.lane.b32.xlu0 %v610_v35, %s866_s9  ;;  %v433_v9 = vadd.f32 %v431_v13, %v426_v5  ;;  %v353_v45 = vadd.f32 %v351_v17, %v346_v39  ;;  %v570_v46 = vadd.f32 %v568_v3, %v563_v6  ;;  %v582_v19 = vmul.f32 %v841_v28, %v1165_v18 }
  0xad   : > { %v562_v42 = vadd.f32 %v837_v0, %v560_v27  ;;  %v574_v29 = vmul.f32 %v840_v40, %v1098_v58  ;;  %v581_v32 = vmul.f32 %v841_v28, %v1108_v63 }
  0xae   : > { %v440_v48 = vadd.f32 %v438_v20, %v433_v9  ;;  %v360_v49 = vadd.f32 %v358_v33, %v353_v45  ;;  %v577_v31 = vadd.f32 %v575_v56, %v570_v46 }
  0xaf   : > { %v569_v50 = vadd.f32 %v567_v30, %v562_v42 }
  0xb0   : > { %v367_v22 = vadd.f32 %v365_v2, %v360_v49  ;;  %v584_v34 = vadd.f32 %v582_v19, %v577_v31 }
  0xb1   : > { %v576_v26 = vadd.f32 %v574_v29, %v569_v50 }
  0xb3   : > { %v583_v36 = vadd.f32 %v581_v32, %v576_v26 }
  0xf5   : > { %v543_v18 = vpop.permute.xlu2 %542 }
  0xf6   : > { %v548_v58 = vsel %vm403_vm1, %v511_v14, %v543_v18 }
  0xf7   : > { %759 = vst.msk [vmem:[%s208_s18 + $0x20] sm:$0xff] %vm406_vm2, %v548_v58 }
  0xfd   : > { %v545_v35 = vpop.permute.xlu2 %544 }
  0xfe   : > { %v549_v51 = vsel %vm403_vm1, %v512_v4, %v545_v35 }
  0xff   : > { %760 = vst.msk [vmem:[%s208_s18 + $0x28] sm:$0xff] %vm406_vm2, %v549_v51 }
 0x10d   : > { %v471_v63 = vpop.permute.xlu1 %470 }
 0x10e   : > { %v476_v60 = vsel %vm403_vm1, %v439_v55, %v471_v63  ;;  %v398_v37 = vpop.permute.xlu0 %397 }
 0x10f   : > { %747 = vst.msk [vmem:[%s208_s18 + $0x10] sm:$0xff] %vm406_vm2, %v476_v60  ;;  %v404_v43 = vsel %vm403_vm1, %v366_v7, %v398_v37 }
 0x110   : > { %407 = vst.msk [vmem:[%s208_s18] sm:$0xff] %vm406_vm2, %v404_v43 }
 0x115   : > { %v473_v44 = vpop.permute.xlu1 %472 }
 0x116   : > { %v477_v8 = vsel %vm403_vm1, %v440_v48, %v473_v44  ;;  %v400_v47 = vpop.permute.xlu0 %399 }
 0x117   : > { %748 = vst.msk [vmem:[%s208_s18 + $0x18] sm:$0xff] %vm406_vm2, %v477_v8  ;;  %v405_v10 = vsel %vm403_vm1, %v367_v22, %v400_v47 }
 0x118   : > { %408 = vst.msk [vmem:[%s208_s18 + $0x8] sm:$0xff] %vm406_vm2, %v405_v10 }
 0x11d   : > { %v617_v14 = vpop.permute.xlu1 %616 }
 0x11e   : > { %v621_v52 = vsel %vm403_vm1, %v584_v34, %v617_v14  ;;  %v615_v24 = vpop.permute.xlu0 %614 }
 0x11f   : > { %772 = vst.msk [vmem:[%s208_s18 + $0x38] sm:$0xff] %vm406_vm2, %v621_v52  ;;  %v620_v41 = vsel %vm403_vm1, %v583_v36, %v615_v24 }
 0x120   : > { %771 = vst.msk [vmem:[%s208_s18 + $0x30] sm:$0xff] %vm406_vm2, %v620_v41 }
 0x121 PF: > { %s13_s14 = sadd.s32 1, %s864_s14   ;;  %s1289_s12 = smov %s860_s13 }
 0x122   : > { %p10_p5 = scmp.ge.s32.totalorder %s13_s14, 4   ;;  %s1290_s13 = smov %s1292_s15 }
 0x124   :  { %12 = sbr.rel (!%p10_p5) target bundleno = 2 (0x2), region = 84 }

</bundles_post_ra>
